<compile_context>
chip_gen: v6e
topology: v6e:2x2x1
jax: 0.10.0
libtpu: 0.0.40
codegen_flags: <defaults>
</compile_context>

<pallas_src>
import functools

import jax
import jax.numpy as jnp
from jax.experimental import pallas as pl
from jax.experimental.pallas import tpu as pltpu

EMBED_DIM = 128
FEAT_C = 2048          # ResNet50 pre-pool channel count
FEAT_H = 7             # consistent with a 224-input ResNet50 stage-5 map
FEAT_W = 7
BATCH = 2
TK = 1024              # C-chunk size (2 chunks); keep >= 1024 per review


def _embedding_head_kernel(x_ref, w_ref, b_ref, o_ref, *, batch, hw, inv_hw):
    """Fused: (avg-pool folded into matmul) -> linear -> L2 normalize.

    Per grid step k (C chunk):
      x_ref : (B*HW, TK) f32  VMEM   raw pre-pool feature rows (chunk of C)
      w_ref : (TK, E)    bf16 VMEM   fc.weight chunk (pre-transposed)
      b_ref : (1, E)     f32  VMEM   fc.bias (resident, constant index)
      o_ref : (B, E)     f32  VMEM   output block, resident accumulator (P3)
    """
    k = pl.program_id(0)

    @pl.when(k == 0)
    def _init():
        o_ref[...] = jnp.zeros_like(o_ref)

    # Pool-into-matmul: dot the raw feature rows against the weight chunk.
    # bf16 MXU inputs (in-kernel cast of x rides the VALU), f32 accumulation.
    partial = jnp.dot(x_ref[...].astype(jnp.bfloat16), w_ref[...],
                      preferred_element_type=jnp.float32)        # (B*HW, E)

    # Per-batch spatial reduce on the tiny (B*HW, E) f32 result; the 1/(HW)
    # scale is folded into a single (B, E) multiply at finalize.
    pooled = jnp.concatenate(
        [jnp.sum(partial[i * hw:(i + 1) * hw], axis=0, keepdims=True)
         for i in range(batch)], axis=0)                          # (B, E)
    o_ref[...] += pooled

    @pl.when(k == pl.num_programs(0) - 1)
    def _finalize():
        emb = o_ref[...] * inv_hw + b_ref[...]                    # (B, E)
        # F.normalize(p=2, dim=1): x / clamp(||x||, 1e-12)
        # == x * rsqrt(clamp(||x||^2, 1e-24)).  rsqrt -> EUP slot.
        sumsq = jnp.sum(emb * emb, axis=-1, keepdims=True)        # (B, 1)
        inv_norm = jax.lax.rsqrt(jnp.maximum(sumsq, 1e-24))
        o_ref[...] = emb * inv_norm


def embedding_head(feat_nhwc, fc_w_t_bf16, fc_b, *, tk=TK):
    """feat_nhwc: (B, H, W, 2048) f32 (channels-last backbone output);
    fc_w_t_bf16: (2048, E) bf16, pre-converted once at parameter-load time;
    fc_b: (E,) f32."""
    B, H, W, C = feat_nhwc.shape
    E = fc_w_t_bf16.shape[1]
    HW = H * W
    M = B * HW
    assert C % tk == 0
    n_k = C // tk

    # Free, contiguous reshape — NO dtype cast in the wrapper (review item 1).
    x2d = feat_nhwc.reshape(M, C)
    b2 = fc_b.reshape(1, E).astype(jnp.float32)

    kernel = functools.partial(
        _embedding_head_kernel, batch=B, hw=HW, inv_hw=1.0 / float(HW))

    flops = 2 * M * C * E                              # ~51 MFLOP fused
    bytes_accessed = (M * C * 4                        # x, f32
                      + C * E * 2                      # w, bf16
                      + E * 4                          # bias
                      + B * E * 4)                     # output

    return pl.pallas_call(
        kernel,
        out_shape=jax.ShapeDtypeStruct((B, E), jnp.float32),
        grid=(n_k,),
        in_specs=[
            pl.BlockSpec((M, tk), lambda k: (0, k)),   # x chunk along C
            pl.BlockSpec((tk, E), lambda k: (k, 0)),   # w chunk along C
            pl.BlockSpec((1, E), lambda k: (0, 0)),    # bias, resident
        ],
        out_specs=pl.BlockSpec((B, E), lambda k: (0, 0)),  # resident accumulator
        compiler_params=pltpu.CompilerParams(
            dimension_semantics=("arbitrary",)),       # K is a reduction axis
        cost_estimate=pl.CostEstimate(
            flops=flops, transcendentals=B, bytes_accessed=bytes_accessed),
    )(x2d, fc_w_t_bf16, b2)


def _reference(feat_nhwc, fc_w_t, fc_b):
    pooled = jnp.mean(feat_nhwc.astype(jnp.float32), axis=(1, 2))   # (B, 2048)
    emb = pooled @ fc_w_t.astype(jnp.float32) + fc_b.astype(jnp.float32)
    norm = jnp.sqrt(jnp.sum(emb * emb, axis=1, keepdims=True))
    return emb / jnp.maximum(norm, 1e-12)


if __name__ == "__main__":
    key = jax.random.PRNGKey(0)
    k_feat, k_w, k_b = jax.random.split(key, 3)

    # Synthetic pre-pool feature map (stands in for the ResNet50 backbone
    # output), generated channels-last in f32 — no wrapper-side casts.
    feat = jax.random.normal(
        k_feat, (BATCH, FEAT_H, FEAT_W, FEAT_C), jnp.float32)

    # fc = nn.Linear(2048, 128) with nn.init.xavier_normal_(fc.weight):
    #   std = sqrt(2 / (fan_in + fan_out)); stored pre-transposed as (2048, E).
    xavier_std = (2.0 / (FEAT_C + EMBED_DIM)) ** 0.5
    fc_w_t = xavier_std * jax.random.normal(k_w, (FEAT_C, EMBED_DIM), jnp.float32)
    # nn.Linear default bias init: U(-1/sqrt(fan_in), 1/sqrt(fan_in)).
    bias_bound = 1.0 / (FEAT_C ** 0.5)
    fc_b = jax.random.uniform(
        k_b, (EMBED_DIM,), jnp.float32, minval=-bias_bound, maxval=bias_bound)

    # Parameter-load-time conversion: done ONCE, outside the per-call path.
    fc_w_bf16 = jax.block_until_ready(fc_w_t.astype(jnp.bfloat16))

    out = embedding_head(feat, fc_w_bf16, fc_b)
    out = jax.block_until_ready(out)

    ref = _reference(feat, fc_w_t, fc_b)
    assert out.shape == (BATCH, EMBED_DIM)
    # x and fc.weight are each rounded to bf16 exactly once (no stacked
    # rounding of the pooled LHS any more); 2e-2 comfortably covers it.
    assert jnp.allclose(out, ref, atol=2e-2, rtol=2e-2), (
        float(jnp.max(jnp.abs(out - ref))))
    # Rows must be unit-norm after F.normalize (normalization done in f32).
    assert jnp.allclose(jnp.linalg.norm(out, axis=1), 1.0, atol=1e-3)

    print("KERNEL_OK")
</pallas_src>

<mosaic_0001>
module attributes {stable_mosaic.version = 11 : i64} {
  func.func @_embedding_head_kernel(%arg0: i32, %arg1: memref<98x1024xf32, #tpu.memory_space<vmem>>, %arg2: memref<1024x128xbf16, #tpu.memory_space<vmem>>, %arg3: memref<1x128xf32, #tpu.memory_space<vmem>>, %arg4: memref<2x128xf32, #tpu.memory_space<vmem>>) attributes {dimension_semantics = [#tpu.dimension_semantics<arbitrary>], iteration_bounds = array<i64: 2>, scalar_prefetch = 0 : i64, scratch_operands = 0 : i64, tpu.core_type = #tpu.core_type<tc>, window_params = [{transform_indices = @transform_0, window_bounds = array<i64: 98, 1024>}, {transform_indices = @transform_1, window_bounds = array<i64: 1024, 128>}, {pipeline_mode = #tpu.pipeline_mode<synchronous>, transform_indices = @transform_2, window_bounds = array<i64: 1, 128>}, {pipeline_mode = #tpu.pipeline_mode<synchronous>, transform_indices = @transform_3, window_bounds = array<i64: 2, 128>}]} {
    %c0_i32 = arith.constant 0 : i32
    %0 = arith.cmpi eq, %arg0, %c0_i32 : i32
    %1 = arith.extui %0 : i1 to i32
    %c0_i32_0 = arith.constant 0 : i32
    %2 = arith.cmpi ne, %1, %c0_i32_0 : i32
    scf.if %2 {
      %cst_11 = arith.constant 0.000000e+00 : f32
      %20 = vector.broadcast %cst_11 : f32 to vector<2x128xf32>
      %c0_12 = arith.constant 0 : index
      %c0_13 = arith.constant 0 : index
      %21 = vector.load %arg4[%c0_12, %c0_13] : memref<2x128xf32, #tpu.memory_space<vmem>>, vector<2x128xf32>
      tpu.vector_store %arg4[%c0_12, %c0_13], %20 {strides = array<i32>} : memref<2x128xf32, #tpu.memory_space<vmem>>, vector<2x128xf32>,
    } else {
    }
    %c0 = arith.constant 0 : index
    %c0_1 = arith.constant 0 : index
    %3 = vector.load %arg1[%c0, %c0_1] : memref<98x1024xf32, #tpu.memory_space<vmem>>, vector<98x1024xf32>
    %4 = arith.truncf %3 : vector<98x1024xf32> to vector<98x1024xbf16>
    %c0_2 = arith.constant 0 : index
    %c0_3 = arith.constant 0 : index
    %5 = vector.load %arg2[%c0_2, %c0_3] : memref<1024x128xbf16, #tpu.memory_space<vmem>>, vector<1024x128xbf16>
    %cst = arith.constant dense<0.000000e+00> : vector<98x128xf32>
    %6 = tpu.matmul %4, %5, %cst {dimension_numbers = #tpu.dot_dimension_numbers<[1], [0], [0], [1], [0, 0, 1, 1], [], []>} : vector<98x1024xbf16>, vector<1024x128xbf16>, vector<98x128xf32> -> vector<98x128xf32>
    %7 = vector.extract_strided_slice %6 {offsets = [0, 0], sizes = [49, 128], strides = [1, 1]} : vector<98x128xf32> to vector<49x128xf32>
    %cst_4 = arith.constant dense<0.000000e+00> : vector<128xf32>
    %8 = vector.multi_reduction <add>, %7, %cst_4 [0] : vector<49x128xf32> to vector<128xf32>
    %9 = vector.shape_cast %8 : vector<128xf32> to vector<1x128xf32>
    %10 = vector.extract_strided_slice %6 {offsets = [49, 0], sizes = [49, 128], strides = [1, 1]} : vector<98x128xf32> to vector<49x128xf32>
    %cst_5 = arith.constant dense<0.000000e+00> : vector<128xf32>
    %11 = vector.multi_reduction <add>, %10, %cst_5 [0] : vector<49x128xf32> to vector<128xf32>
    %12 = vector.shape_cast %11 : vector<128xf32> to vector<1x128xf32>
    %13 = tpu.concatenate %9, %12 in 0 : vector<1x128xf32>, vector<1x128xf32> -> vector<2x128xf32>
    %c0_6 = arith.constant 0 : index
    %c0_7 = arith.constant 0 : index
    %14 = vector.load %arg4[%c0_6, %c0_7] : memref<2x128xf32, #tpu.memory_space<vmem>>, vector<2x128xf32>
    %15 = arith.addf %14, %13 : vector<2x128xf32>
    %c0_8 = arith.constant 0 : index
    %c0_9 = arith.constant 0 : index
    %16 = vector.load %arg4[%c0_8, %c0_9] : memref<2x128xf32, #tpu.memory_space<vmem>>, vector<2x128xf32>
    tpu.vector_store %arg4[%c0_8, %c0_9], %15 {strides = array<i32>} : memref<2x128xf32, #tpu.memory_space<vmem>>, vector<2x128xf32>,
    %c1_i32 = arith.constant 1 : i32
    %17 = arith.cmpi eq, %arg0, %c1_i32 : i32
    %18 = arith.extui %17 : i1 to i32
    %c0_i32_10 = arith.constant 0 : i32
    %19 = arith.cmpi ne, %18, %c0_i32_10 : i32
    scf.if %19 {
      %c0_11 = arith.constant 0 : index
      %c0_12 = arith.constant 0 : index
      %20 = vector.load %arg4[%c0_11, %c0_12] : memref<2x128xf32, #tpu.memory_space<vmem>>, vector<2x128xf32>
      %cst_13 = arith.constant 0.0204081628 : f32
      %21 = vector.broadcast %cst_13 : f32 to vector<2x128xf32>
      %22 = arith.mulf %20, %21 : vector<2x128xf32>
      %c0_14 = arith.constant 0 : index
      %c0_15 = arith.constant 0 : index
      %23 = vector.load %arg3[%c0_14, %c0_15] : memref<1x128xf32, #tpu.memory_space<vmem>>, vector<1x128xf32>
      %24 = vector.broadcast %23 : vector<1x128xf32> to vector<2x128xf32>
      %25 = arith.addf %22, %24 : vector<2x128xf32>
      %26 = arith.mulf %25, %25 : vector<2x128xf32>
      %cst_16 = arith.constant dense<0.000000e+00> : vector<2xf32>
      %27 = vector.multi_reduction <add>, %26, %cst_16 [1] : vector<2x128xf32> to vector<2xf32>
      %28 = vector.shape_cast %27 : vector<2xf32> to vector<2x1xf32>
      %cst_17 = arith.constant 1.000000e-24 : f32
      %29 = vector.broadcast %cst_17 : f32 to vector<2x1xf32>
      %30 = arith.maximumf %28, %29 : vector<2x1xf32>
      %31 = math.rsqrt %30 : vector<2x1xf32>
      %32 = vector.broadcast %31 : vector<2x1xf32> to vector<2x128xf32>
      %33 = arith.mulf %25, %32 : vector<2x128xf32>
      %c0_18 = arith.constant 0 : index
      %c0_19 = arith.constant 0 : index
      %34 = vector.load %arg4[%c0_18, %c0_19] : memref<2x128xf32, #tpu.memory_space<vmem>>, vector<2x128xf32>
      tpu.vector_store %arg4[%c0_18, %c0_19], %33 {strides = array<i32>} : memref<2x128xf32, #tpu.memory_space<vmem>>, vector<2x128xf32>,
    } else {
    }
    return
  }
  func.func @transform_0(%arg0: i32) -> (i32, i32) {
    %c0_i32 = arith.constant 0 : i32
    %c0_i32_0 = arith.constant 0 : i32
    return %c0_i32, %arg0 : i32, i32
  }
  func.func @transform_1(%arg0: i32) -> (i32, i32) {
    %c0_i32 = arith.constant 0 : i32
    %c0_i32_0 = arith.constant 0 : i32
    return %arg0, %c0_i32 : i32, i32
  }
  func.func @transform_2(%arg0: i32) -> (i32, i32) {
    %c0_i32 = arith.constant 0 : i32
    %c0_i32_0 = arith.constant 0 : i32
    %c0_i32_1 = arith.constant 0 : i32
    return %c0_i32, %c0_i32_0 : i32, i32
  }
  func.func @transform_3(%arg0: i32) -> (i32, i32) {
    %c0_i32 = arith.constant 0 : i32
    %c0_i32_0 = arith.constant 0 : i32
    %c0_i32_1 = arith.constant 0 : i32
    return %c0_i32, %c0_i32_0 : i32, i32
  }
}

</mosaic_0001>

<bundles_post_ra>
// kernel: tpu_custom_call.1
= control target key start
LH: loop header
LB: loop body
LE: loop exit
PB: predicated region body
PF: predicated region fallthrough
CT: control target
= control target key end

     0   :  { %8 = vsyncpa [#allocation3], 0  ;;  %s2438_s0 = inlined_call_operand.hbm [shape: f32[98,2048], index: 0, kind: input, shape index: {}]   ;;  %s2439_s1 = inlined_call_operand.hbm [shape: bf16[2048,128], index: 1, kind: input, shape index: {}]   ;;  %s2440_s2 = inlined_call_operand.vmem [shape: f32[1,128], index: 2, kind: input, shape index: {}]   ;;  %s2441_s3 = inlined_call_operand.hbm [shape: f32[2,128], index: 3, kind: output, shape index: {}]  }
   0x1   :  { %10 = vsyncpa [#allocation3 + $0x1], 0 }
   0x2   :  { %11 = vsyncpa [#allocation6], 0 }
   0x3   :  { %13 = vsyncpa [#allocation6 + $0x1], 0 }
   0x4   :  { %14 = vsyncpa [#allocation4], 0  ;;  %s2002_s12 = smov 0   ;;  %s2004_s13 = smov 0  }
   0x5   :  { %s2006_s14 = smov 0   ;;  %s2008_s15 = smov 0  }
   0x6 LB: > { %s2021_s16 = sadd.s32 4294967295, %s1972_s15   ;;  %s2024_s17 = sadd.s32 1, %s1972_s15   ;;  %s1972_s15 = sphi %s2008_s15, %s2450_s15   ;;  %s1968_s14 = sphi %s2006_s14, %s2449_s14   ;;  %s1964_s13 = sphi %s2004_s13, %s2448_s13   ;;  %s1960_s12 = sphi %s2002_s12, %s2447_s12  }
   0x7   : > { %s24_s18 = ssub.s32 %s1972_s15, %s2024_s17  ;;  %s27_s19 = sadd.s32 1, %s1968_s14 }
   0x8   : > { %p25_p0 = scmp.eq.s32.totalorder %s24_s18, 0  ;;  %p34_p1 = scmp.ne.s32.totalorder %s1968_s14, %s1964_s13 }
   0x9   : > { %p35_p2 = scmp.eq.s32.totalorder %s1972_s15, 0  ;;  %p40_p3 = scmp.ne.s32.totalorder %s1964_s13, %s1960_s12 }
   0xa   : > { %s2034_s20 = scalar_select %p25_p0, %s1968_s14, %s27_s19  }
   0xb   : > { %p36_p4 = por %p35_p2, %p34_p1  ;;  %p41_p5 = scmp.eq.s32.totalorder %s2021_s16, 0 }
   0xc   : > { %p1743_p6 = scmp.lt.s32.totalorder %s1972_s15, 2  ;;  %s2043_s22 = sand.u32 1, %s1968_s14  }
   0xd   : > { %p2038_p7 = por %p41_p5, %p40_p3  ;;  %s1726_s23 = smul.u32 832, %s2043_s22 }
   0xe   : > { %s1492_s24 = sshll.u32 %s1972_s15, 10  ;;  %p2047_p8 = pnand %p1743_p6, %p36_p4 }
   0xf   : > { %s2443_s21 = scalar_select %p2038_p7, 1, 0 }
  0x10   : > { %s2054_s28 = scalar_lea.hbm %s2438_s0, %s1492_s24  ;;  %s139_s29 = scalar_lea.vmem [#allocation2], %s1726_s23 }
  0x11   : > { %s146_s30 = sshll.u32 %s139_s29, 4  ;;  %s136_s4 = scalar_lea.sflag [#allocation3], %s2043_s22  ;;  %s2056_s30 = int_to_ptr.vmem [resolvable:$true] %s146_s30 }
  0x12   : > { %s1850_s5 = scalar_lea.hbm %s2054_s28, 13312  ;;  %p1852_p10 = pneg %p2047_p8 }
  0x13   : > { %p1851_p9 = scmp.ne.s32.totalorder %s2054_s28, %s1850_s5  ;;  %s1855_s8 = scalar_lea.hbm %s2438_s0, 26624 }
  0x14   : > { %p1856_p13 = scmp.lt.s32.totalorder %s2054_s28, %s2438_s0  ;;  %p1857_p0 = scmp.lt.s32.totalorder %s1855_s8, %s1850_s5 }
  0x15   : > { %p1853_p11 = pnand %p1852_p10, %p1851_p9 }
  0x16   : > { %p1858_p1 = por %p1857_p0, %p1856_p13 }
  0x17   : > { %p1854_p12 = pneg %p1853_p11 }
  0x19   : > { %p1859_p2 = pnand %p1858_p1, %p1854_p12 }
  0x1b   : > { %1862 = shalt.err (!%p1859_p2)
}
  0x1c   : > { %s1863_s11 = scalar_lea.vmem %s2056_s30, 13312  ;;  %s1974_s12 = smov [#allocation2]  }
  0x1d   : > { %p1864_p3 = scmp.ne.s32.totalorder %s2056_s30, %s1863_s11  ;;  %s1868_s18 = sshll.u32 %s1974_s12, 4  ;;  %s1869_s18 = int_to_ptr.vmem [resolvable:$false] %s1868_s18 }
  0x1e   : > { %s1870_s19 = scalar_lea.vmem %s1869_s18, 26624  ;;  %p1871_p6 = scmp.lt.s32.totalorder %s2056_s30, %s1869_s18 }
  0x1f   : > { %p1866_p4 = pnand %p1864_p3, %p1852_p10  ;;  %p1872_p9 = scmp.lt.s32.totalorder %s1870_s19, %s1863_s11 }
  0x21   : > { %p1867_p5 = pneg %p1866_p4  ;;  %p1873_p11 = por %p1872_p9, %p1871_p6 }
  0x23   : > { %p1874_p13 = pnand %p1873_p11, %p1867_p5 }
  0x25   : > { %1877 = shalt.err (!%p1874_p13)
}
  0x26   : > { %s1975_s23 = smov 2048   ;;  %s1976_s24 = smov 1024  }
  0x27   : > { %s1977_s26 = smov 64   ;;  %p1419_p12 = scmp.ge.s32.totalorder %s1972_s15, 1 }
  0x28   : > { %1739 = dma.hbm_to_vmem [thread:$0]  (!%p2047_p8), %s2054_s28, 13312, %s2056_s30, %s136_s4, %s1975_s23, %s1976_s24, %s1977_s26  }
  0x29   : > { %p175_p0 = scmp.lt.s32.totalorder %s1972_s15, 3  ;;  %s1416_s27 = sshll.u32 %s2043_s22, 9 }
  0x2a   : > { %s1493_s5 = sshll.u32 %s1972_s15, 13  ;;  %s160_s6 = scalar_lea.vmem [#allocation5], %s1416_s27 }
  0x2b   : > { %p2089_p1 = pnand %p1419_p12, %p175_p0  ;;  %s167_s7 = sshll.u32 %s160_s6, 4  ;;  %s2099_s7 = int_to_ptr.vmem [resolvable:$true] %s167_s7 }
  0x2c   : > { %s2097_s10 = scalar_lea.hbm %s2439_s1, %s1493_s5  ;;  %s157_s28 = scalar_lea.sflag [#allocation6], %s2043_s22 }
  0x2d   : > { %s1878_s30 = scalar_lea.hbm %s2097_s10, 8192  ;;  %s1883_s11 = scalar_lea.hbm %s2439_s1, 16384 }
  0x2e   : > { %p1879_p2 = scmp.ne.s32.totalorder %s2097_s10, %s1878_s30  ;;  %p1884_p5 = scmp.lt.s32.totalorder %s2097_s10, %s2439_s1 }
  0x2f   : > { %p1885_p6 = scmp.lt.s32.totalorder %s1883_s11, %s1878_s30 }
  0x30   : > { %p1881_p3 = pnand %p1879_p2, %p1852_p10 }
  0x31   : > { %p1886_p9 = por %p1885_p6, %p1884_p5 }
  0x32   : > { %p1882_p4 = pneg %p1881_p3 }
  0x34   : > { %p1887_p11 = pnand %p1886_p9, %p1882_p4 }
  0x36   : > { %1890 = shalt.err (!%p1887_p11)
}
  0x37   : > { %s1891_s19 = scalar_lea.vmem %s2099_s7, 8192  ;;  %s1978_s23 = smov [#allocation5]  }
  0x38   : > { %p1892_p13 = scmp.ne.s32.totalorder %s2099_s7, %s1891_s19  ;;  %s1896_s24 = sshll.u32 %s1978_s23, 4  ;;  %s1897_s24 = int_to_ptr.vmem [resolvable:$false] %s1896_s24 }
  0x39   : > { %s1898_s27 = scalar_lea.vmem %s1897_s24, 16384  ;;  %p1899_p2 = scmp.lt.s32.totalorder %s2099_s7, %s1897_s24 }
  0x3a   : > { %p1894_p12 = pnand %p1892_p13, %p1852_p10  ;;  %p1900_p3 = scmp.lt.s32.totalorder %s1898_s27, %s1891_s19 }
  0x3c   : > { %p1895_p0 = pneg %p1894_p12  ;;  %p1901_p7 = por %p1900_p3, %p1899_p2 }
  0x3e   : > { %p1902_p5 = pnand %p1901_p7, %p1895_p0 }
  0x40   : > { %1905 = shalt.err (!%p1902_p5)
}
  0x41   : > { %s1979_s5 = smov 4   ;;  %179 = sbr.rel (%p2089_p1) target bundleno = 632 (0x278), region = 32 }
  0x42   : > { %1742 = dma.hbm_to_vmem [thread:$0]  (!%p2047_p8), %s2097_s10, 8192, %s2099_s7, %s157_s28, %s1977_s26, %s1977_s26, %s1979_s5  }
  0x43   : > { %s181_s6 = sand.u32 (!%p2089_p1), 1, %s1964_s13   ;;  %p2446_p7 = scmp.ne.s32.totalorder (!%p2089_p1), %s2443_s21, 0 }
  0x44   : > { %s1727_s8 = smul.u32 (!%p2089_p1), 832, %s181_s6  ;;  %s182_s9 = scalar_lea.sflag (!%p2089_p1), [#allocation3], %s181_s6 }
  0x46   : > { %s2131_s30 = scalar_lea.vmem [#allocation2], %s1727_s8 }
  0x47   : > { %1947 = dma.done.wait (%p2446_p7), %s182_s9, 13312  }
  0x48   : > { %1949 = vsyncadd (%p2446_p7), %s182_s9, 4294953984  ;;  %s1420_s22 = sshll.u32 %s181_s6, 9  ;;  %s191_s25 = scalar_lea.sflag [#allocation6], %s181_s6 }
  0x49   : > { %s2137_s15 = scalar_lea.vmem [#allocation5], %s1420_s22 }
  0x4a   : > { %1951 = dma.done.wait (%p2446_p7), %s191_s25, 8192  }
  0x4b   : > { %1953 = vsyncadd (%p2446_p7), %s191_s25, 4294959104  ;;  %p1421_p8 = scmp.ne.s32.totalorder %s2021_s16, 0 }
  0x4d   : > { %223 = sbr.rel (%p1421_p8) target bundleno = 84 (0x54), region = 44 }
  0x52   : > { %v1980_v0 = vmov 0.0  }
  0x53   : > { %224 = vst [vmem:[#allocation7] sm:$0x3] %v1980_v0 }
  0x54 PF: > { %v1784_v1 = vld [vmem:[%s2137_s15 + $0x78] sm:$0xff]   ;;  %v1788_v5 = vld [vmem:[%s2137_s15 + $0x70] sm:$0xff]   ;;  %v1792_v9 = vld [vmem:[%s2137_s15 + $0x68] sm:$0xff]   ;;  %vm1254_vm0 = vcmask 1040384   ;;  %vm1270_vm1 = vcmask 1046528   ;;  %p1486_p10 = scmp.ne.s32.totalorder %s2021_s16, 1 }
  0x55   : > { %v1785_v2 = vld [vmem:[%s2137_s15 + $0xf8] sm:$0xff]   ;;  %1494 = vmatprep.subr.bf16.mxu0 %v1784_v1  ;;  %v1789_v6 = vld [vmem:[%s2137_s15 + $0xf0] sm:$0xff]   ;;  %v1793_v10 = vld [vmem:[%s2137_s15 + $0xe8] sm:$0xff]  }
  0x56   : > { %v1786_v3 = vld [vmem:[%s2137_s15 + $0x38] sm:$0xff]   ;;  %1552 = vmatprep.subr.bf16.mxu1 %v1785_v2  ;;  %v1790_v7 = vld [vmem:[%s2137_s15 + $0x30] sm:$0xff]   ;;  %v1794_v11 = vld [vmem:[%s2137_s15 + $0x28] sm:$0xff]  }
  0x57   : > { %v1787_v4 = vld [vmem:[%s2137_s15 + $0xb8] sm:$0xff]   ;;  %1495 = vmatpush3.bf16.msra.mxu0 %v1786_v3  ;;  %v1791_v8 = vld [vmem:[%s2137_s15 + $0xb0] sm:$0xff]   ;;  %v1795_v12 = vld [vmem:[%s2137_s15 + $0xa8] sm:$0xff]  }
  0x58   : > { %1553 = vmatpush3.bf16.msra.mxu1 %v1787_v4  ;;  %1496 = vmatprep.subr.bf16.mxu0 %v1788_v5  ;;  %v1796_v13 = vld [vmem:[%s2137_s15 + $0x60] sm:$0xff]   ;;  %v1800_v17 = vld [vmem:[%s2137_s15 + $0x58] sm:$0xff]   ;;  %v1804_v21 = vld [vmem:[%s2137_s15 + $0x50] sm:$0xff]  }
  0x59   : > { %1554 = vmatprep.subr.bf16.mxu1 %v1789_v6  ;;  %v1797_v14 = vld [vmem:[%s2137_s15 + $0xe0] sm:$0xff]   ;;  %v1801_v18 = vld [vmem:[%s2137_s15 + $0xd8] sm:$0xff]   ;;  %v1805_v22 = vld [vmem:[%s2137_s15 + $0xd0] sm:$0xff]  }
  0x5a   : > { %v1798_v15 = vld [vmem:[%s2137_s15 + $0x20] sm:$0xff]   ;;  %v1802_v19 = vld [vmem:[%s2137_s15 + $0x18] sm:$0xff]   ;;  %v1806_v23 = vld [vmem:[%s2137_s15 + $0x10] sm:$0xff]  }
  0x5b   : > { %1497 = vmatpush3.bf16.msra.mxu0 %v1790_v7  ;;  %v1799_v16 = vld [vmem:[%s2137_s15 + $0xa0] sm:$0xff]   ;;  %v1803_v20 = vld [vmem:[%s2137_s15 + $0x98] sm:$0xff]   ;;  %v1807_v24 = vld [vmem:[%s2137_s15 + $0x90] sm:$0xff]  }
  0x5c   : > { %1555 = vmatpush3.bf16.msra.mxu1 %v1791_v8  ;;  %1498 = vmatprep.subr.bf16.mxu0 %v1792_v9  ;;  %v1808_v25 = vld [vmem:[%s2137_s15 + $0x48] sm:$0xff]   ;;  %v1812_v29 = vld [vmem:[%s2137_s15 + $0x40] sm:$0xff]   ;;  %v228_v35 = vld [vmem:[%s2131_s30 + $0x18] sm:$0xff] }
  0x5d   : > { %1556 = vmatprep.subr.bf16.mxu1 %v1793_v10  ;;  %v1809_v26 = vld [vmem:[%s2137_s15 + $0xc8] sm:$0xff]   ;;  %v1813_v30 = vld [vmem:[%s2137_s15 + $0xc0] sm:$0xff]   ;;  %v236_v37 = vld [vmem:[%s2131_s30 + $0x58] sm:$0xff] }
  0x5e   : > { %v1810_v27 = vld [vmem:[%s2137_s15 + $0x8] sm:$0xff]   ;;  %v1814_v31 = vld [vmem:[%s2137_s15] sm:$0xff]   ;;  %v332_v40 = vpack.c.bf16 %v236_v37, %v228_v35  ;;  %v227_v42 = vld [vmem:[%s2131_s30 + $0x10] sm:$0xff] }
  0x5f   : > { %1499 = vmatpush3.bf16.msra.mxu0 %v1794_v11  ;;  %v1811_v28 = vld [vmem:[%s2137_s15 + $0x88] sm:$0xff]   ;;  %v1815_v32 = vld [vmem:[%s2137_s15 + $0x80] sm:$0xff]   ;;  %v235_v43 = vld [vmem:[%s2131_s30 + $0x50] sm:$0xff] }
  0x60   : > { %1557 = vmatpush3.bf16.msra.mxu1 %v1795_v12  ;;  %1500 = vmatprep.subr.bf16.mxu0 %v1796_v13  ;;  %v226_v33 = vld [vmem:[%s2131_s30 + $0x8] sm:$0xff]  ;;  %v225_v38 = vld [vmem:[%s2131_s30] sm:$0xff]  ;;  %v331_v44 = vpack.c.bf16 %v235_v43, %v227_v42  ;;  %v1816_v45 = vld [vmem:[%s2137_s15 + $0x178] sm:$0xff]  }
  0x61   : > { %1558 = vmatprep.subr.bf16.mxu1 %v1797_v14  ;;  %v234_v34 = vld [vmem:[%s2131_s30 + $0x48] sm:$0xff]  ;;  %v233_v39 = vld [vmem:[%s2131_s30 + $0x40] sm:$0xff]  ;;  %1017 = vmatprep.mubr.bf16.mxu1 %v332_v40  ;;  %v1817_v46 = vld [vmem:[%s2137_s15 + $0x138] sm:$0xff]  }
  0x62   : > { %v330_v36 = vpack.c.bf16 %v234_v34, %v226_v33  ;;  %v329_v41 = vpack.c.bf16 %v233_v39, %v225_v38  ;;  %v1818_v47 = vld [vmem:[%s2137_s15 + $0x1f8] sm:$0xff]   ;;  %v242_v49 = vld [vmem:[%s2131_s30 + $0x88] sm:$0xff]  ;;  %v1820_v55 = vld [vmem:[%s2137_s15 + $0x170] sm:$0xff]  }
  0x63   : > { %1501 = vmatpush3.bf16.msra.mxu0 %v1798_v15  ;;  %v1819_v48 = vld [vmem:[%s2137_s15 + $0x1b8] sm:$0xff]   ;;  %v250_v50 = vld [vmem:[%s2131_s30 + $0xc8] sm:$0xff]  ;;  %v241_v56 = vld [vmem:[%s2131_s30 + $0x80] sm:$0xff] }
  0x64   : > { %1559 = vmatpush3.bf16.msra.mxu1 %v1799_v16  ;;  %1502 = vmatprep.subr.bf16.mxu0 %v1800_v17  ;;  %v244_v51 = vld [vmem:[%s2131_s30 + $0x98] sm:$0xff]  ;;  %v338_v53 = vpack.c.bf16 %v250_v50, %v242_v49  ;;  %v249_v57 = vld [vmem:[%s2131_s30 + $0xc0] sm:$0xff]  ;;  %v243_v58 = vld [vmem:[%s2131_s30 + $0x90] sm:$0xff] }
  0x65   : > { %1560 = vmatprep.subr.bf16.mxu1 %v1801_v18  ;;  %929 = vmatprep.mubr.bf16.mxu0 %v330_v36  ;;  %v252_v52 = vld [vmem:[%s2131_s30 + $0xd8] sm:$0xff]  ;;  %v337_v59 = vpack.c.bf16 %v249_v57, %v241_v56  ;;  %v251_v60 = vld [vmem:[%s2131_s30 + $0xd0] sm:$0xff]  ;;  %v1824_v1 = vld [vmem:[%s2137_s15 + $0x168] sm:$0xff]  }
  0x66   : > { %v340_v54 = vpack.c.bf16 %v252_v52, %v244_v51  ;;  %v339_v61 = vpack.c.bf16 %v251_v60, %v243_v58  ;;  %v1821_v62 = vld [vmem:[%s2137_s15 + $0x130] sm:$0xff]   ;;  %v258_v2 = vld [vmem:[%s2131_s30 + $0x108] sm:$0xff]  ;;  %v260_v5 = vld [vmem:[%s2131_s30 + $0x118] sm:$0xff] }
  0x67   : > { %1503 = vmatpush3.bf16.msra.mxu0 %v1802_v19  ;;  %v1822_v63 = vld [vmem:[%s2137_s15 + $0x1f0] sm:$0xff]   ;;  %v266_v3 = vld [vmem:[%s2131_s30 + $0x148] sm:$0xff]  ;;  %v268_v6 = vld [vmem:[%s2131_s30 + $0x158] sm:$0xff] }
  0x68   : > { %1561 = vmatpush3.bf16.msra.mxu1 %v1803_v20  ;;  %1504 = vmatprep.subr.bf16.mxu0 %v1804_v21  ;;  %v1823_v0 = vld [vmem:[%s2137_s15 + $0x1b0] sm:$0xff]   ;;  %v346_v4 = vpack.c.bf16 %v266_v3, %v258_v2  ;;  %v348_v7 = vpack.c.bf16 %v268_v6, %v260_v5  ;;  %v1825_v8 = vld [vmem:[%s2137_s15 + $0x128] sm:$0xff]   ;;  %v257_v9 = vld [vmem:[%s2131_s30 + $0x100] sm:$0xff] }
  0x69   : > { %1562 = vmatprep.subr.bf16.mxu1 %v1805_v22  ;;  %v265_v10 = vld [vmem:[%s2131_s30 + $0x140] sm:$0xff]  ;;  %v259_v11 = vld [vmem:[%s2131_s30 + $0x110] sm:$0xff]  ;;  %v1826_v15 = vld [vmem:[%s2137_s15 + $0x1e8] sm:$0xff]  }
  0x6a   : > { %v267_v12 = vld [vmem:[%s2131_s30 + $0x150] sm:$0xff]  ;;  %v345_v13 = vpack.c.bf16 %v265_v10, %v257_v9  ;;  %v1827_v16 = vld [vmem:[%s2137_s15 + $0x1a8] sm:$0xff]   ;;  %v1828_v17 = vld [vmem:[%s2137_s15 + $0x160] sm:$0xff]  }
  0x6b   : > { %1505 = vmatpush3.bf16.msra.mxu0 %v1806_v23  ;;  %v347_v14 = vpack.c.bf16 %v267_v12, %v259_v11  ;;  %v1829_v18 = vld [vmem:[%s2137_s15 + $0x120] sm:$0xff]   ;;  %v274_v19 = vld [vmem:[%s2131_s30 + $0x188] sm:$0xff]  ;;  %v276_v21 = vld [vmem:[%s2131_s30 + $0x198] sm:$0xff] }
  0x6c   : > { %1563 = vmatpush3.bf16.msra.mxu1 %v1807_v24  ;;  %1506 = vmatprep.subr.bf16.mxu0 %v1808_v25  ;;  %v282_v20 = vld [vmem:[%s2131_s30 + $0x1c8] sm:$0xff]  ;;  %v284_v23 = vld [vmem:[%s2131_s30 + $0x1d8] sm:$0xff]  ;;  %v1830_v25 = vld [vmem:[%s2137_s15 + $0x1e0] sm:$0xff]  }
  0x6d   : > { %1564 = vmatprep.subr.bf16.mxu1 %v1809_v26  ;;  %v354_v22 = vpack.c.bf16 %v282_v20, %v274_v19  ;;  %v356_v24 = vpack.c.bf16 %v284_v23, %v276_v21  ;;  %v273_v26 = vld [vmem:[%s2131_s30 + $0x180] sm:$0xff]  ;;  %v1832_v33 = vld [vmem:[%s2137_s15 + $0x158] sm:$0xff]   ;;  %v290_v36 = vld [vmem:[%s2131_s30 + $0x208] sm:$0xff] }
  0x6e   : > { %v1833_v34 = vld [vmem:[%s2137_s15 + $0x118] sm:$0xff]   ;;  %v298_v37 = vld [vmem:[%s2131_s30 + $0x248] sm:$0xff]  ;;  %v289_v43 = vld [vmem:[%s2131_s30 + $0x200] sm:$0xff] }
  0x6f   : > { %1507 = vmatpush3.bf16.msra.mxu0 %v1810_v27  ;;  %v281_v27 = vld [vmem:[%s2131_s30 + $0x1c0] sm:$0xff]  ;;  %v1834_v35 = vld [vmem:[%s2137_s15 + $0x1d8] sm:$0xff]   ;;  %v362_v40 = vpack.c.bf16 %v298_v37, %v290_v36  ;;  %v1836_v49 = vld [vmem:[%s2137_s15 + $0x150] sm:$0xff]  }
  0x70   : > { %1565 = vmatpush3.bf16.msra.mxu1 %v1811_v28  ;;  %1508 = vmatprep.subr.bf16.mxu0 %v1812_v29  ;;  %v353_v28 = vpack.c.bf16 %v281_v27, %v273_v26  ;;  %v275_v29 = vld [vmem:[%s2131_s30 + $0x190] sm:$0xff]  ;;  %v292_v38 = vld [vmem:[%s2131_s30 + $0x218] sm:$0xff]  ;;  %v305_v58 = vld [vmem:[%s2131_s30 + $0x280] sm:$0xff] }
  0x71   : > { %1566 = vmatprep.subr.bf16.mxu1 %v1813_v30  ;;  %v283_v30 = vld [vmem:[%s2131_s30 + $0x1d0] sm:$0xff]  ;;  %v300_v39 = vld [vmem:[%s2131_s30 + $0x258] sm:$0xff]  ;;  %v313_v60 = vld [vmem:[%s2131_s30 + $0x2c0] sm:$0xff] }
  0x72   : > { %v1835_v42 = vld [vmem:[%s2137_s15 + $0x198] sm:$0xff]   ;;  %v1837_v50 = vld [vmem:[%s2137_s15 + $0x110] sm:$0xff]   ;;  %v1841_v2 = vld [vmem:[%s2137_s15 + $0x108] sm:$0xff]  }
  0x73   : > { %1509 = vmatpush3.bf16.msra.mxu0 %v1814_v31  ;;  %v355_v31 = vpack.c.bf16 %v283_v30, %v275_v29  ;;  %v1838_v51 = vld [vmem:[%s2137_s15 + $0x1d0] sm:$0xff]   ;;  %v308_v56 = vld [vmem:[%s2131_s30 + $0x298] sm:$0xff]  ;;  %v1842_v3 = vld [vmem:[%s2137_s15 + $0x1c8] sm:$0xff]  }
  0x74   : > { %1567 = vmatpush3.bf16.msra.mxu1 %v1815_v32  ;;  %1610 = vmatprep.subr.bf16.mxu0 %v1816_v45  ;;  %v1831_v32 = vld [vmem:[%s2137_s15 + $0x1a0] sm:$0xff]   ;;  %v291_v45 = vld [vmem:[%s2131_s30 + $0x210] sm:$0xff]  ;;  %v316_v57 = vld [vmem:[%s2131_s30 + $0x2d8] sm:$0xff] }
  0x75   : > { %1668 = vmatprep.subr.bf16.mxu1 %v1818_v47  ;;  %v299_v47 = vld [vmem:[%s2131_s30 + $0x250] sm:$0xff]  ;;  %v322_v5 = vld [vmem:[%s2131_s30 + $0x308] sm:$0x3]  ;;  %v324_v6 = vld [vmem:[%s2131_s30 + $0x318] sm:$0x3] }
  0x76   : > { %930 = vmatmul.mubr.bf16.vlgmr.msra.gmra.mxu0 %v329_v41  ;;  %v364_v41 = vpack.c.bf16 %v300_v39, %v292_v38  ;;  %v1839_v52 = vld [vmem:[%s2137_s15 + $0x190] sm:$0xff]   ;;  %v380_v9 = vpack.c.bf16 %v324_v6, %v324_v6  ;;  %v1844_v11 = vld [vmem:[%s2137_s15 + $0x140] sm:$0xff]   ;;  %v232_v20 = vld [vmem:[%s2131_s30 + $0x38] sm:$0xff] }
  0x77   : > { %1018 = vmatmul.mubr.bf16.vlgmr.msra.gmra.mxu1 %v331_v44  ;;  %1611 = vmatpush3.bf16.msra.mxu0 %v1817_v46  ;;  %v297_v44 = vld [vmem:[%s2131_s30 + $0x240] sm:$0xff]  ;;  %v323_v10 = vld [vmem:[%s2131_s30 + $0x310] sm:$0x3]  ;;  %v240_v21 = vld [vmem:[%s2131_s30 + $0x78] sm:$0xff] }
  0x78   : > { %1669 = vmatpush3.bf16.msra.mxu1 %v1819_v48  ;;  %937 = vmatprep.mubr.bf16.mxu0 %v338_v53  ;;  %v361_v46 = vpack.c.bf16 %v297_v44, %v289_v43  ;;  %v363_v48 = vpack.c.bf16 %v299_v47, %v291_v45  ;;  %v306_v53 = vld [vmem:[%s2131_s30 + $0x288] sm:$0xff]  ;;  %v1845_v12 = vld [vmem:[%s2137_s15 + $0x100] sm:$0xff]   ;;  %v239_v26 = vld [vmem:[%s2131_s30 + $0x70] sm:$0xff] }
  0x79   : > { %1025 = vmatprep.mubr.bf16.mxu1 %v340_v54  ;;  %1612 = vmatprep.subr.bf16.mxu0 %v1820_v55  ;;  %v314_v54 = vld [vmem:[%s2131_s30 + $0x2c8] sm:$0xff]  ;;  %v229_v23 = vld [vmem:[%s2131_s30 + $0x20] sm:$0xff]  ;;  %v248_v29 = vld [vmem:[%s2131_s30 + $0xb8] sm:$0xff] }
  0x7a   : > { %1670 = vmatprep.subr.bf16.mxu1 %v1822_v63  ;;  %v370_v55 = vpack.c.bf16 %v314_v54, %v306_v53  ;;  %v369_v63 = vpack.c.bf16 %v313_v60, %v305_v58  ;;  %v246_v27 = vld [vmem:[%s2131_s30 + $0xa8] sm:$0xff]  ;;  %v256_v30 = vld [vmem:[%s2131_s30 + $0xf8] sm:$0xff]  ;;  %v253_v36 = vld [vmem:[%s2131_s30 + $0xe0] sm:$0xff] }
  0x7b   : > { %1613 = vmatpush3.bf16.msra.mxu0 %v1821_v62  ;;  %v315_v62 = vld [vmem:[%s2131_s30 + $0x2d0] sm:$0xff]  ;;  %v262_v39 = vld [vmem:[%s2131_s30 + $0x128] sm:$0xff]  ;;  %v261_v47 = vld [vmem:[%s2131_s30 + $0x120] sm:$0xff] }
  0x7c   : > { %1671 = vmatpush3.bf16.msra.mxu1 %v1823_v0  ;;  %1614 = vmatprep.subr.bf16.mxu0 %v1824_v1  ;;  %v1840_v0 = vld [vmem:[%s2137_s15 + $0x148] sm:$0xff]   ;;  %v247_v37 = vld [vmem:[%s2131_s30 + $0xb0] sm:$0xff]  ;;  %v280_v53 = vld [vmem:[%s2131_s30 + $0x1b8] sm:$0xff] }
  0x7d   : > { %1672 = vmatprep.subr.bf16.mxu1 %v1826_v15  ;;  %v379_v15 = vpack.c.bf16 %v323_v10, %v323_v10  ;;  %v255_v38 = vld [vmem:[%s2131_s30 + $0xf0] sm:$0xff]  ;;  %v288_v54 = vld [vmem:[%s2131_s30 + $0x1f8] sm:$0xff]  ;;  %v285_v60 = vld [vmem:[%s2131_s30 + $0x1e0] sm:$0xff] }
  0x7e   : > { %938 = vmatmul.mubr.bf16.gmra.mxu0 %v337_v59  ;;  %v372_v59 = vpack.c.bf16 %v316_v57, %v308_v56  ;;  %v343_v44 = vpack.c.bf16 %v255_v38, %v247_v37  ;;  %v360_v58 = vpack.c.bf16 %v288_v54, %v280_v53  ;;  %v303_v10 = vld [vmem:[%s2131_s30 + $0x270] sm:$0xff] }
  0x7f   : > { %1026 = vmatmul.mubr.bf16.gmra.mxu1 %v339_v61  ;;  %945 = vmatprep.mubr.bf16.mxu0 %v346_v4  ;;  %v307_v61 = vld [vmem:[%s2131_s30 + $0x290] sm:$0xff]  ;;  %v1843_v4 = vld [vmem:[%s2137_s15 + $0x188] sm:$0xff]  }
  0x80   : > { %1033 = vmatprep.mubr.bf16.mxu1 %v348_v7  ;;  %1615 = vmatpush3.bf16.msra.mxu0 %v1825_v8  ;;  %v371_v1 = vpack.c.bf16 %v315_v62, %v307_v61  ;;  %v321_v7 = vld [vmem:[%s2131_s30 + $0x300] sm:$0x3]  ;;  %v378_v8 = vpack.c.bf16 %v322_v5, %v322_v5  ;;  %v279_v61 = vld [vmem:[%s2131_s30 + $0x1b0] sm:$0xff] }
  0x81   : > { %1673 = vmatpush3.bf16.msra.mxu1 %v1827_v16  ;;  %1616 = vmatprep.subr.bf16.mxu0 %v1828_v17  ;;  %v1847_v16 = vld [vmem:[%s2137_s15 + $0x180] sm:$0xff]   ;;  %v230_v17 = vld [vmem:[%s2131_s30 + $0x28] sm:$0xff]  ;;  %v287_v62 = vld [vmem:[%s2131_s30 + $0x1f0] sm:$0xff] }
  0x82   : > { %1674 = vmatprep.subr.bf16.mxu1 %v1830_v25  ;;  %v231_v25 = vld [vmem:[%s2131_s30 + $0x30] sm:$0xff] }
  0x84   : > { %1617 = vmatpush3.bf16.msra.mxu0 %v1829_v18  ;;  %v238_v18 = vld [vmem:[%s2131_s30 + $0x68] sm:$0xff] }
  0x85   : > { %1675 = vmatpush3.bf16.msra.mxu1 %v1831_v32  ;;  %1618 = vmatprep.subr.bf16.mxu0 %v1832_v33  ;;  %v334_v19 = vpack.c.bf16 %v238_v18, %v230_v17  ;;  %v335_v32 = vpack.c.bf16 %v239_v26, %v231_v25 }
  0x86   : > { %946 = vmatmul.mubr.bf16.gmra.mxu0 %v345_v13  ;;  %1676 = vmatprep.subr.bf16.mxu1 %v1834_v35  ;;  %v377_v13 = vpack.c.bf16 %v321_v7, %v321_v7  ;;  %v245_v35 = vld [vmem:[%s2131_s30 + $0xa0] sm:$0xff] }
  0x87   : > { %1034 = vmatmul.mubr.bf16.gmra.mxu1 %v347_v14  ;;  %953 = vmatprep.mubr.bf16.mxu0 %v354_v22  ;;  %v1846_v14 = vld [vmem:[%s2137_s15 + $0x1c0] sm:$0xff]   ;;  %v336_v22 = vpack.c.bf16 %v240_v21, %v232_v20  ;;  %v341_v43 = vpack.c.bf16 %v253_v36, %v245_v35  ;;  %v311_v21 = vld [vmem:[%s2131_s30 + $0x2b0] sm:$0xff] }
  0x88   : > { %1041 = vmatprep.mubr.bf16.mxu1 %v356_v24  ;;  %1619 = vmatpush3.bf16.msra.mxu0 %v1833_v34  ;;  %v237_v24 = vld [vmem:[%s2131_s30 + $0x60] sm:$0xff]  ;;  %v344_v34 = vpack.c.bf16 %v256_v30, %v248_v29  ;;  %v327_v30 = vld [vmem:[%s2131_s30 + $0x330] sm:$0x3] }
  0x89   : > { %1677 = vmatpush3.bf16.msra.mxu1 %v1835_v42  ;;  %1620 = vmatprep.subr.bf16.mxu0 %v1836_v49  ;;  %v272_v42 = vld [vmem:[%s2131_s30 + $0x178] sm:$0xff]  ;;  %v263_v49 = vld [vmem:[%s2131_s30 + $0x130] sm:$0xff]  ;;  %v293_v7 = vld [vmem:[%s2131_s30 + $0x220] sm:$0xff] }
  0x8a   : > { %1678 = vmatprep.subr.bf16.mxu1 %v1838_v51  ;;  %v278_v51 = vld [vmem:[%s2131_s30 + $0x1a8] sm:$0xff]  ;;  %v317_v20 = vld [vmem:[%s2131_s30 + $0x2e0] sm:$0xff] }
  0x8b   : > { %v325_v29 = vld [vmem:[%s2131_s30 + $0x320] sm:$0x3] }
  0x8c   : > { %1621 = vmatpush3.bf16.msra.mxu0 %v1837_v50  ;;  %v271_v50 = vld [vmem:[%s2131_s30 + $0x170] sm:$0xff] }
  0x8d   : > { %1679 = vmatpush3.bf16.msra.mxu1 %v1839_v52  ;;  %1622 = vmatprep.subr.bf16.mxu0 %v1840_v0  ;;  %v286_v52 = vld [vmem:[%s2131_s30 + $0x1e8] sm:$0xff]  ;;  %v351_v56 = vpack.c.bf16 %v271_v50, %v263_v49 }
  0x8e   : > { %954 = vmatmul.mubr.bf16.gmra.mxu0 %v353_v28  ;;  %1680 = vmatprep.subr.bf16.mxu1 %v1842_v3  ;;  %v254_v28 = vld [vmem:[%s2131_s30 + $0xe8] sm:$0xff]  ;;  %v358_v57 = vpack.c.bf16 %v286_v52, %v278_v51 }
  0x8f   : > { %1042 = vmatmul.mubr.bf16.gmra.mxu1 %v355_v31  ;;  %961 = vmatprep.mubr.bf16.mxu0 %v362_v40  ;;  %v333_v31 = vpack.c.bf16 %v237_v24, %v229_v23  ;;  %v342_v33 = vpack.c.bf16 %v254_v28, %v246_v27  ;;  %v270_v40 = vld [vmem:[%s2131_s30 + $0x168] sm:$0xff]  ;;  %v328_v24 = vld [vmem:[%s2131_s30 + $0x338] sm:$0x3] }
  0x90   : > { %1049 = vmatprep.mubr.bf16.mxu1 %v364_v41  ;;  %1623 = vmatpush3.bf16.msra.mxu0 %v1841_v2  ;;  %v264_v41 = vld [vmem:[%s2131_s30 + $0x138] sm:$0xff]  ;;  %v350_v45 = vpack.c.bf16 %v270_v40, %v262_v39  ;;  %v302_v0 = vld [vmem:[%s2131_s30 + $0x268] sm:$0xff]  ;;  %v384_v28 = vpack.c.bf16 %v328_v24, %v328_v24 }
  0x91   : > { %1681 = vmatpush3.bf16.msra.mxu1 %v1843_v4  ;;  %1624 = vmatprep.subr.bf16.mxu0 %v1844_v11  ;;  %v304_v2 = vld [vmem:[%s2131_s30 + $0x278] sm:$0xff]  ;;  %v359_v4 = vpack.c.bf16 %v287_v62, %v279_v61  ;;  %v310_v11 = vld [vmem:[%s2131_s30 + $0x2a8] sm:$0xff] }
  0x92   : > { %1682 = vmatprep.subr.bf16.mxu1 %v1846_v14  ;;  %v320_v14 = vld [vmem:[%s2131_s30 + $0x2f8] sm:$0xff]  ;;  %v326_v23 = vld [vmem:[%s2131_s30 + $0x328] sm:$0x3] }
  0x93   : > { %v382_v27 = vpack.c.bf16 %v326_v23, %v326_v23 }
  0x94   : > { %1625 = vmatpush3.bf16.msra.mxu0 %v1845_v12  ;;  %v318_v12 = vld [vmem:[%s2131_s30 + $0x2e8] sm:$0xff] }
  0x95   : > { %1683 = vmatpush3.bf16.msra.mxu1 %v1847_v16  ;;  %v374_v17 = vpack.c.bf16 %v318_v12, %v310_v11 }
  0x96   : > { %962 = vmatmul.mubr.bf16.gmra.mxu0 %v361_v46  ;;  %v352_v46 = vpack.c.bf16 %v272_v42, %v264_v41 }
  0x97   : > { %1050 = vmatmul.mubr.bf16.gmra.mxu1 %v363_v48  ;;  %969 = vmatprep.mubr.bf16.mxu0 %v370_v55  ;;  %v269_v48 = vld [vmem:[%s2131_s30 + $0x160] sm:$0xff] }
  0x98   : > { %1057 = vmatprep.mubr.bf16.mxu1 %v372_v59  ;;  %v349_v55 = vpack.c.bf16 %v269_v48, %v261_v47  ;;  %v277_v59 = vld [vmem:[%s2131_s30 + $0x1a0] sm:$0xff] }
  0x99   : > { %v357_v3 = vpack.c.bf16 %v285_v60, %v277_v59 }
  0x9e   : > { %970 = vmatmul.mubr.bf16.gmra.mxu0 %v369_v63  ;;  %v294_v63 = vld [vmem:[%s2131_s30 + $0x228] sm:$0xff] }
  0x9f   : > { %1058 = vmatmul.mubr.bf16.gmra.mxu1 %v371_v1  ;;  %977 = vmatprep.mubr.bf16.mxu0 %v378_v8  ;;  %v296_v1 = vld [vmem:[%s2131_s30 + $0x238] sm:$0xff]  ;;  %v366_v5 = vpack.c.bf16 %v302_v0, %v294_v63  ;;  %v301_v8 = vld [vmem:[%s2131_s30 + $0x260] sm:$0xff] }
  0xa0   : > { %1065 = vmatprep.mubr.bf16.mxu1 %v380_v9  ;;  %v368_v6 = vpack.c.bf16 %v304_v2, %v296_v1  ;;  %v295_v9 = vld [vmem:[%s2131_s30 + $0x230] sm:$0xff] }
  0xa1   : > { %v367_v16 = vpack.c.bf16 %v303_v10, %v295_v9 }
  0xa6   : > { %978 = vmatmul.mubr.bf16.gmra.mxu0 %v377_v13  ;;  %v312_v13 = vld [vmem:[%s2131_s30 + $0x2b8] sm:$0xff] }
  0xa7   : > { %1066 = vmatmul.mubr.bf16.gmra.mxu1 %v379_v15  ;;  %1105 = vmatprep.mubr.bf16.mxu0 %v334_v19  ;;  %v365_v15 = vpack.c.bf16 %v301_v8, %v293_v7  ;;  %v376_v18 = vpack.c.bf16 %v320_v14, %v312_v13  ;;  %v309_v19 = vld [vmem:[%s2131_s30 + $0x2a0] sm:$0xff] }
  0xa8   : > { %1193 = vmatprep.mubr.bf16.mxu1 %v336_v22  ;;  %v319_v22 = vld [vmem:[%s2131_s30 + $0x2f0] sm:$0xff]  ;;  %v373_v25 = vpack.c.bf16 %v317_v20, %v309_v19 }
  0xa9   : > { %v375_v26 = vpack.c.bf16 %v319_v22, %v311_v21 }
  0xae   : > { %1106 = vmatmul.mubr.bf16.vlgmr.msra.gmra.mxu0 %v333_v31  ;;  %v381_v31 = vpack.c.bf16 %v325_v29, %v325_v29 }
  0xaf   : > { %1194 = vmatmul.mubr.bf16.vlgmr.msra.gmra.mxu1 %v335_v32  ;;  %1113 = vmatprep.mubr.bf16.mxu0 %v342_v33  ;;  %v383_v32 = vpack.c.bf16 %v327_v30, %v327_v30 }
  0xb0   : > { %1201 = vmatprep.mubr.bf16.mxu1 %v344_v34 }
  0xb6   : > { %1114 = vmatmul.mubr.bf16.gmra.mxu0 %v341_v43 }
  0xb7   : > { %1202 = vmatmul.mubr.bf16.gmra.mxu1 %v343_v44  ;;  %1121 = vmatprep.mubr.bf16.mxu0 %v350_v45 }
  0xb8   : > { %1209 = vmatprep.mubr.bf16.mxu1 %v352_v46 }
  0xbe   : > { %1122 = vmatmul.mubr.bf16.gmra.mxu0 %v349_v55 }
  0xbf   : > { %1210 = vmatmul.mubr.bf16.gmra.mxu1 %v351_v56  ;;  %1129 = vmatprep.mubr.bf16.mxu0 %v358_v57 }
  0xc0   : > { %1217 = vmatprep.mubr.bf16.mxu1 %v360_v58 }
  0xc6   : > { %1130 = vmatmul.mubr.bf16.gmra.mxu0 %v357_v3 }
  0xc7   : > { %1218 = vmatmul.mubr.bf16.gmra.mxu1 %v359_v4  ;;  %1137 = vmatprep.mubr.bf16.mxu0 %v366_v5 }
  0xc8   : > { %1225 = vmatprep.mubr.bf16.mxu1 %v368_v6 }
  0xce   : > { %1138 = vmatmul.mubr.bf16.gmra.mxu0 %v365_v15 }
  0xcf   : > { %1226 = vmatmul.mubr.bf16.gmra.mxu1 %v367_v16  ;;  %1145 = vmatprep.mubr.bf16.mxu0 %v374_v17 }
  0xd0   : > { %1233 = vmatprep.mubr.bf16.mxu1 %v376_v18 }
  0xd6   : > { %1146 = vmatmul.mubr.bf16.gmra.mxu0 %v373_v25 }
  0xd7   : > { %1234 = vmatmul.mubr.bf16.gmra.mxu1 %v375_v26  ;;  %1153 = vmatprep.mubr.bf16.mxu0 %v382_v27 }
  0xd8   : > { %1241 = vmatprep.mubr.bf16.mxu1 %v384_v28 }
  0xde   : > { %1154 = vmatmul.mubr.bf16.gmra.mxu0 %v381_v31 }
  0xdf   : > { %1242 = vmatmul.mubr.bf16.gmra.mxu1 %v383_v32 }
 0x136   : > { %v1510_v33 = vpop.f32.mrf.mxu0 }
 0x137   : > { %v1568_v34 = vpop.f32.mrf.mxu1 }
 0x138   : > { %v1511_v35 = vpop.f32.mrf.mxu0 }
 0x139   : > { %v1512_v36 = vadd.f32 %v1511_v35, %v1510_v33  ;;  %v1569_v37 = vpop.f32.mrf.mxu1 }
 0x13a   : > { %v1570_v38 = vadd.f32 %v1569_v37, %v1568_v34  ;;  %v1513_v39 = vpop.f32.mrf.mxu0 }
 0x13b   : > { %v1571_v40 = vpop.f32.mrf.mxu1 }
 0x13c   : > { %v2312_v41 = vadd.f32 %v1570_v38, %v1512_v36  ;;  %v1514_v42 = vpop.f32.mrf.mxu0 }
 0x13d   : > { %v1515_v43 = vadd.f32 %v1514_v42, %v1513_v39  ;;  %v1572_v44 = vpop.f32.mrf.mxu1 }
 0x13e   : > { %v1573_v45 = vadd.f32 %v1572_v44, %v1571_v40  ;;  %v1516_v46 = vpop.f32.mrf.mxu0 }
 0x13f   : > { %v1574_v47 = vpop.f32.mrf.mxu1 }
 0x140   : > { %v2314_v48 = vadd.f32 %v1573_v45, %v1515_v43  ;;  %v1517_v49 = vpop.f32.mrf.mxu0 }
 0x141   : > { %v1518_v50 = vadd.f32 %v1517_v49, %v1516_v46  ;;  %v1575_v51 = vpop.f32.mrf.mxu1 }
 0x142   : > { %v1576_v52 = vadd.f32 %v1575_v51, %v1574_v47  ;;  %v1519_v53 = vpop.f32.mrf.mxu0 }
 0x143   : > { %v1577_v54 = vpop.f32.mrf.mxu1 }
 0x144   : > { %v2316_v55 = vadd.f32 %v1576_v52, %v1518_v50  ;;  %v1520_v56 = vpop.f32.mrf.mxu0 }
 0x145   : > { %v1521_v57 = vadd.f32 %v1520_v56, %v1519_v53  ;;  %v1578_v58 = vpop.f32.mrf.mxu1 }
 0x146   : > { %v1579_v59 = vadd.f32 %v1578_v58, %v1577_v54  ;;  %v1522_v60 = vpop.f32.mrf.mxu0 }
 0x147   : > { %v1580_v61 = vpop.f32.mrf.mxu1 }
 0x148   : > { %v2318_v62 = vadd.f32 %v1579_v59, %v1521_v57  ;;  %v1523_v63 = vpop.f32.mrf.mxu0 }
 0x149   : > { %v1524_v0 = vadd.f32 %v1523_v63, %v1522_v60  ;;  %v1581_v1 = vpop.f32.mrf.mxu1 }
 0x14a   : > { %v1582_v2 = vadd.f32 %v1581_v1, %v1580_v61  ;;  %v1525_v3 = vpop.f32.mrf.mxu0 }
 0x14b   : > { %v1583_v4 = vpop.f32.mrf.mxu1 }
 0x14c   : > { %v2320_v5 = vadd.f32 %v1582_v2, %v1524_v0  ;;  %v1526_v6 = vpop.f32.mrf.mxu0 }
 0x14d   : > { %v1527_v7 = vadd.f32 %v1526_v6, %v1525_v3  ;;  %v1584_v8 = vpop.f32.mrf.mxu1 }
 0x14e   : > { %v1585_v9 = vadd.f32 %v1584_v8, %v1583_v4  ;;  %v1528_v10 = vpop.f32.mrf.mxu0 }
 0x14f   : > { %v1586_v11 = vpop.f32.mrf.mxu1 }
 0x150   : > { %v2322_v12 = vadd.f32 %v1585_v9, %v1527_v7  ;;  %v1529_v13 = vpop.f32.mrf.mxu0 }
 0x151   : > { %v1530_v14 = vadd.f32 %v1529_v13, %v1528_v10  ;;  %v1587_v15 = vpop.f32.mrf.mxu1 }
 0x152   : > { %v1588_v16 = vadd.f32 %v1587_v15, %v1586_v11  ;;  %v1531_v17 = vpop.f32.mrf.mxu0 }
 0x153   : > { %v1589_v18 = vpop.f32.mrf.mxu1 }
 0x154   : > { %v2324_v19 = vadd.f32 %v1588_v16, %v1530_v14  ;;  %v1532_v20 = vpop.f32.mrf.mxu0 }
 0x155   : > { %v1533_v21 = vadd.f32 %v1532_v20, %v1531_v17  ;;  %v1590_v22 = vpop.f32.mrf.mxu1 }
 0x156   : > { %v1591_v23 = vadd.f32 %v1590_v22, %v1589_v18  ;;  %v2326_v24 = vpop.f32.mrf.mxu0 }
 0x157   : > { %v2328_v25 = vpop.f32.mrf.mxu1 }
 0x158   : > { %v2330_v26 = vadd.f32 %v1591_v23, %v1533_v21  ;;  %v2332_v27 = vpop.f32.mrf.mxu0 }
 0x159   : > { %v2334_v28 = vpop.f32.mrf.mxu1 }
 0x15a   : > { %v2336_v29 = vpop.f32.mrf.mxu0 }
 0x15b   : > { %v2338_v30 = vpop.f32.mrf.mxu1 }
 0x15c   : > { %v2340_v31 = vpop.f32.mrf.mxu0 }
 0x15d   : > { %v2342_v32 = vpop.f32.mrf.mxu1 }
 0x15e   : > { %v2344_v33 = vpop.f32.mrf.mxu0 }
 0x15f   : > { %v2346_v34 = vpop.f32.mrf.mxu1 }
 0x160   : > { %v2348_v35 = vpop.f32.mrf.mxu0 }
 0x161   : > { %v2350_v36 = vpop.f32.mrf.mxu1 }
 0x162   : > { %v2352_v37 = vpop.f32.mrf.mxu0 }
 0x163   : > { %v2354_v38 = vpop.f32.mrf.mxu1 }
 0x164   : > { %v2356_v39 = vpop.f32.mrf.mxu0 }
 0x165   : > { %v2358_v40 = vpop.f32.mrf.mxu1 }
 0x166   : > { %v2360_v42 = vpop.f32.mrf.mxu0 }
 0x167   : > { %v2362_v43 = vpop.f32.mrf.mxu1 }
 0x168   : > { %v2364_v44 = vpop.f32.mrf.mxu0 }
 0x169   : > { %v2366_v45 = vpop.f32.mrf.mxu1 }
 0x16a   : > { %v1549_v46 = vpop.f32.mrf.mxu0 }
 0x16b   : > { %v1607_v47 = vpop.f32.mrf.mxu1 }
 0x16c   : > { %v1550_v49 = vpop.f32.mrf.mxu0 }
 0x16d   : > { %v1608_v50 = vpop.f32.mrf.mxu1 }
 0x16e   : > { %v1626_v51 = vpop.f32.mrf.mxu0 }
 0x16f   : > { %v1684_v52 = vpop.f32.mrf.mxu1 }
 0x170   : > { %v1627_v53 = vpop.f32.mrf.mxu0 }
 0x171   : > { %v1628_v54 = vadd.f32 %v1627_v53, %v1626_v51  ;;  %v1685_v56 = vpop.f32.mrf.mxu1 }
 0x172   : > { %v1629_v57 = vpop.f32.mrf.mxu0  ;;  %v1686_v1 = vadd.f32 %v1685_v56, %v1684_v52 }
 0x173   : > { %v1687_v58 = vpop.f32.mrf.mxu1  ;;  %v1108_v60 = vadd.f32 %v1628_v54, %v2312_v41 }
 0x174   : > { %v1630_v59 = vpop.f32.mrf.mxu0 }
 0x175   : > { %v1631_v61 = vadd.f32 %v1630_v59, %v1629_v57  ;;  %v1688_v63 = vpop.f32.mrf.mxu1  ;;  %v1196_v7 = vadd.f32 %v1686_v1, %v1108_v60 }
 0x176   : > { %v1632_v0 = vpop.f32.mrf.mxu0  ;;  %v1689_v3 = vadd.f32 %v1688_v63, %v1687_v58 }
 0x177   : > { %v1111_v2 = vadd.f32 %v1631_v61, %v2314_v48  ;;  %v1690_v4 = vpop.f32.mrf.mxu1 }
 0x178   : > { %v1633_v6 = vpop.f32.mrf.mxu0 }
 0x179   : > { %v1199_v8 = vadd.f32 %v1689_v3, %v1111_v2  ;;  %v1634_v9 = vadd.f32 %v1633_v6, %v1632_v0  ;;  %v1691_v10 = vpop.f32.mrf.mxu1 }
 0x17a   : > { %v1635_v11 = vpop.f32.mrf.mxu0  ;;  %v1692_v15 = vadd.f32 %v1691_v10, %v1690_v4 }
 0x17b   : > { %v1249_v13 = vadd.f32 %v1199_v8, %v1196_v7  ;;  %v1116_v14 = vadd.f32 %v1634_v9, %v2316_v55  ;;  %v1693_v16 = vpop.f32.mrf.mxu1 }
 0x17c   : > { %v1636_v41 = vpop.f32.mrf.mxu0 }
 0x17d   : > { %v1204_v17 = vadd.f32 %v1692_v15, %v1116_v14  ;;  %v1637_v18 = vadd.f32 %v1636_v41, %v1635_v11  ;;  %v1694_v20 = vpop.f32.mrf.mxu1 }
 0x17e   : > { %v1638_v21 = vpop.f32.mrf.mxu0  ;;  %v1695_v23 = vadd.f32 %v1694_v20, %v1693_v16 }
 0x17f   : > { %v1250_v22 = vadd.f32 %v1249_v13, %v1204_v17  ;;  %v1119_v48 = vadd.f32 %v1637_v18, %v2318_v62  ;;  %v1696_v46 = vpop.f32.mrf.mxu1  ;;  %v1536_v13 = vadd.f32 %v2332_v27, %v2326_v24 }
 0x180   : > { %v1639_v47 = vpop.f32.mrf.mxu0 }
 0x181   : > { %v1207_v49 = vadd.f32 %v1695_v23, %v1119_v48  ;;  %v1640_v50 = vadd.f32 %v1639_v47, %v1638_v21  ;;  %v1697_v51 = vpop.f32.mrf.mxu1  ;;  %v1539_v21 = vadd.f32 %v2340_v31, %v2336_v29  ;;  %v1542_v29 = vadd.f32 %v2348_v35, %v2344_v33 }
 0x182   : > { %v1641_v52 = vpop.f32.mrf.mxu0  ;;  %v1698_v54 = vadd.f32 %v1697_v51, %v1696_v46  ;;  %v1603_v33 = vadd.f32 %v2358_v40, %v2354_v38  ;;  %v1606_v38 = vadd.f32 %v2366_v45, %v2362_v43 }
 0x183   : > { %v1251_v53 = vadd.f32 %v1250_v22, %v1207_v49  ;;  %v1124_v55 = vadd.f32 %v1640_v50, %v2320_v5  ;;  %v1699_v56 = vpop.f32.mrf.mxu1  ;;  %v1597_v22 = vadd.f32 %v2342_v32, %v2338_v30  ;;  %v1600_v30 = vadd.f32 %v2350_v36, %v2346_v34 }
 0x184   : > { %v1642_v57 = vpop.f32.mrf.mxu0 }
 0x185   : > { %v1212_v58 = vadd.f32 %v1698_v54, %v1124_v55  ;;  %v1643_v59 = vadd.f32 %v1642_v57, %v1641_v52  ;;  %v1700_v60 = vpop.f32.mrf.mxu1  ;;  %v1055_v52 = vadd.f32 %v1597_v22, %v1539_v21 }
 0x186   : > { %v1644_v61 = vpop.f32.mrf.mxu0  ;;  %v1701_v0 = vadd.f32 %v1700_v60, %v1699_v56 }
 0x187   : > { %v1252_v63 = vadd.f32 %v1251_v53, %v1212_v58  ;;  %v1127_v62 = vadd.f32 %v1643_v59, %v2322_v12  ;;  %v1702_v1 = vpop.f32.mrf.mxu1  ;;  %v1594_v12 = vadd.f32 %v2334_v28, %v2328_v25 }
 0x188   : > { %v1645_v2 = vpop.f32.mrf.mxu0 }
 0x189   : > { %v1215_v3 = vadd.f32 %v1701_v0, %v1127_v62  ;;  %v1646_v4 = vadd.f32 %v1645_v2, %v1644_v61  ;;  %v1703_v6 = vpop.f32.mrf.mxu1  ;;  %v1052_v25 = vadd.f32 %v1594_v12, %v1536_v13  ;;  %v1545_v61 = vadd.f32 %v2356_v39, %v2352_v37 }
 0x18a   : > { %v1647_v7 = vpop.f32.mrf.mxu0  ;;  %v1704_v9 = vadd.f32 %v1703_v6, %v1702_v1  ;;  %v1548_v37 = vadd.f32 %v2364_v44, %v2360_v42 }
 0x18b   : > { %v1253_v8 = vadd.f32 %v1252_v63, %v1215_v3  ;;  %v1132_v5 = vadd.f32 %v1646_v4, %v2324_v19  ;;  %v1705_v10 = vpop.f32.mrf.mxu1  ;;  %v1060_v63 = vadd.f32 %v1600_v30, %v1542_v29 }
 0x18c   : > { %v1648_v11 = vpop.f32.mrf.mxu0 }
 0x18d   : > { %v1220_v14 = vadd.f32 %v1704_v9, %v1132_v5  ;;  %v1649_v15 = vadd.f32 %v1648_v11, %v1647_v7  ;;  %v1706_v16 = vpop.f32.mrf.mxu1 }
 0x18e   : > { %v1650_v41 = vpop.f32.mrf.mxu0  ;;  %v1707_v20 = vadd.f32 %v1706_v16, %v1705_v10 }
 0x18f   : > { %v1255_v17 = vsel %vm1254_vm0, %v1220_v14, 0.0  ;;  %v1135_v18 = vadd.f32 %v1649_v15, %v2330_v26  ;;  %v1708_v19 = vpop.f32.mrf.mxu1  ;;  %v1271_v47 = vrot.slane %v1220_v14, 1 }
 0x190   : > { %v2385_v24 = vadd.f32 %v1255_v17, %v1253_v8  ;;  %v1651_v27 = vpop.f32.mrf.mxu0  ;;  %v1063_v8 = vadd.f32 %v1603_v33, %v1545_v61  ;;  %v1068_v17 = vadd.f32 %v1606_v38, %v1548_v37 }
 0x191   : > { %v1223_v28 = vadd.f32 %v1707_v20, %v1135_v18  ;;  %v1652_v48 = vadd.f32 %v1651_v27, %v1650_v41  ;;  %v1709_v23 = vpop.f32.mrf.mxu1 }
 0x192   : > { %v1653_v46 = vpop.f32.mrf.mxu0  ;;  %v1710_v50 = vadd.f32 %v1709_v23, %v1708_v19  ;;  %v1257_v27 = vrot.slane %v2385_v24, 4 }
 0x193   : > { %v1272_v49 = vrot.slane %v1223_v28, 1  ;;  %v1140_v26 = vadd.f32 %v1652_v48, %v1052_v25  ;;  %v1711_v51 = vpop.f32.mrf.mxu1 }
 0x194   : > { %v1654_v31 = vpop.f32.mrf.mxu0 }
 0x195   : > { %v1273_v32 = vsel %vm1270_vm1, %v1271_v47, %v1272_v49  ;;  %v1228_v53 = vadd.f32 %v1710_v50, %v1140_v26  ;;  %v1655_v55 = vadd.f32 %v1654_v31, %v1653_v46  ;;  %v1712_v54 = vpop.f32.mrf.mxu1 }
 0x196   : > { %v1656_v56 = vpop.f32.mrf.mxu0  ;;  %v1713_v59 = vadd.f32 %v1712_v54, %v1711_v51 }
 0x197   : > { %v1274_v57 = vrot.slane %v1228_v53, 1  ;;  %v1143_v58 = vadd.f32 %v1655_v55, %v1055_v52  ;;  %v1714_v60 = vpop.f32.mrf.mxu1 }
 0x198   : > { %v1657_v35 = vpop.f32.mrf.mxu0 }
 0x199   : > { %v1275_v34 = vsel %vm1270_vm1, %v1272_v49, %v1274_v57  ;;  %v1231_v36 = vadd.f32 %v1713_v59, %v1143_v58  ;;  %v1658_v62 = vadd.f32 %v1657_v35, %v1656_v56  ;;  %v1715_v0 = vpop.f32.mrf.mxu1  ;;  %v1258_v49 = vadd.f32 %v1257_v27, %v2385_v24 }
 0x19a   : > { %v1291_v1 = vadd.f32 %v1275_v34, %v1273_v32  ;;  %v1659_v2 = vpop.f32.mrf.mxu0  ;;  %v1716_v6 = vadd.f32 %v1715_v0, %v1714_v60  ;;  %v1305_v60 = vld [vmem:[#allocation7] sm:$0x3] }
 0x19b   : > { %v1276_v3 = vrot.slane %v1231_v36, 1  ;;  %v1148_v4 = vadd.f32 %v1658_v62, %v1060_v63  ;;  %v1717_v7 = vpop.f32.mrf.mxu1  ;;  %v1259_v29 = vrot.slane %v1258_v49, 2 }
 0x19c   : > { %v1660_v39 = vpop.f32.mrf.mxu0 }
 0x19d   : > { %v1277_v40 = vsel %vm1270_vm1, %v1274_v57, %v1276_v3  ;;  %v1236_v5 = vadd.f32 %v1716_v6, %v1148_v4  ;;  %v1661_v9 = vadd.f32 %v1660_v39, %v1659_v2  ;;  %v1718_v10 = vpop.f32.mrf.mxu1  ;;  %v1260_v32 = vadd.f32 %v1259_v29, %v1258_v49 }
 0x19e   : > { %v1292_v11 = vadd.f32 %v1291_v1, %v1277_v40  ;;  %v1662_v13 = vpop.f32.mrf.mxu0  ;;  %v1719_v15 = vadd.f32 %v1718_v10, %v1717_v7 }
 0x19f   : > { %v1278_v12 = vrot.slane %v1236_v5, 1  ;;  %v1151_v14 = vadd.f32 %v1661_v9, %v1063_v8  ;;  %v1720_v16 = vpop.f32.mrf.mxu1  ;;  %v1261_v54 = vrot.slane %v1260_v32, 1 }
 0x1a0   : > { %v1663_v41 = vpop.f32.mrf.mxu0 }
 0x1a1   : > { %v1239_v18 = vadd.f32 %v1719_v15, %v1151_v14  ;;  %v1664_v20 = vadd.f32 %v1663_v41, %v1662_v13  ;;  %v1721_v42 = vpop.f32.mrf.mxu1  ;;  %v1279_v19 = vsel %vm1270_vm1, %v1276_v3, %v1278_v12  ;;  %v1262_v58 = vadd.f32 %v1261_v54, %v1260_v32 }
 0x1a2   : > { %v1665_v44 = vpop.f32.mrf.mxu0  ;;  %v1722_v21 = vadd.f32 %v1721_v42, %v1720_v16  ;;  %v1293_v46 = vadd.f32 %v1292_v11, %v1279_v19 }
 0x1a3   : > { %v1280_v43 = vrot.slane %v1239_v18, 1  ;;  %v1156_v45 = vadd.f32 %v1664_v20, %v1068_v17  ;;  %v1723_v22 = vpop.f32.mrf.mxu1 }
 0x1a4   : > { %v1666_v25 = vpop.f32.mrf.mxu0 }
 0x1a5   : > { %v1281_v28 = vsel %vm1270_vm1, %v1278_v12, %v1280_v43  ;;  %v1244_v48 = vadd.f32 %v1722_v21, %v1156_v45  ;;  %v1724_v23 = vpop.f32.mrf.mxu1 }
 0x1a6   : > { %v1294_v26 = vadd.f32 %v1293_v46, %v1281_v28 }
 0x1a7   : > { %v1282_v47 = vrot.slane %v1244_v48, 1 }
 0x1a9   : > { %v1283_v50 = vsel %vm1270_vm1, %v1280_v43, %v1282_v47  ;;  %v1296_v52 = vsel %vm1254_vm0, %v1282_v47, 0.0 }
 0x1aa   : > { %v1295_v51 = vadd.f32 %v1294_v26, %v1283_v50 }
 0x1ac   : > { %v1297_v31 = vadd.f32 %v1296_v52, %v1295_v51 }
 0x1ae   : > { %v1298_v30 = vrot.slane %v1297_v31, 4 }
 0x1b0   : > { %v1299_v53 = vadd.f32 %v1298_v30, %v1297_v31 }
 0x1b2   : > { %v1300_v55 = vrot.slane %v1299_v53, 2 }
 0x1b4   : > { %v1301_v56 = vadd.f32 %v1300_v55, %v1299_v53 }
 0x1b6   : > { %v1302_v57 = vrot.slane %v1301_v56, 1 }
 0x1b8   : > { %v1303_v59 = vadd.f32 %v1302_v57, %v1301_v56 }
 0x1b9   : > { %1311 = sbr.rel (%p1486_p10) target bundleno = 617 (0x269), region = 48 }
 0x1ba   : > { %v1304_v24 = vsel %vm1254_vm0, %v1262_v58, %v1303_v59 }
 0x1bb   : > { %v1306_v61 = vadd.f32 %v1305_v60, %v1304_v24 }
 0x1bd   : > { %1307 = vst [vmem:[#allocation7] sm:$0x3] %v1306_v61 }
 0x1be   : > { %v1487_v35 = vld [vmem:[%s2440_s2] ss:$0 sm:$0xff]  ;;  %vm1323_vm2 = vcmask 1041408  }
 0x1c4   : > { %v1312_v33 = vld [vmem:[#allocation7] sm:$0x3] }
 0x1c5   : > { %v1313_v63 = vmul.f32 0.020408163, %v1312_v33 }
 0x1c7   : > { %v1321_v34 = vadd.f32 %v1487_v35, %v1313_v63 }
 0x1c9   : > { %v1322_v36 = vmul.f32 %v1321_v34, %v1321_v34 }
 0x1cb   : > { %v1324_v62 = vsel %vm1323_vm2, %v1322_v36, 0.0 }
 0x1cc   : > { %1325 = vadd.xlane.f32.xlu0 %v1324_v62 }
 0x255   : > { %v1326_v0 = vpop.xlane.xlu0 %1325 }
 0x256   : > { %v1327_v1 = vmax.f32 %v1326_v0, 1e-24 }
 0x258   : > { %1848 = vrsqrt.f32 %v1327_v1 }
 0x265   : > { %v1849_v2 = vpop.eup %1848 }
 0x266   : > { %v1329_v3 = vmul.f32 %v1849_v2, %v1321_v34 }
 0x268   : > { %1330 = vst [vmem:[#allocation7] sm:$0x3] %v1329_v3 }
 0x269 PF: > { %p1744_p1 = scmp.eq.s32.totalorder %s2021_s16, 1  ;;  %s1981_s29 = smov [#allocation7]  }
 0x26a   : > { %s1338_s7 = sshll.u32 %s1981_s29, 4  ;;  %s1339_s7 = int_to_ptr.vmem [resolvable:$true] %s1338_s7 }
 0x26b   : > { %s1906_s10 = scalar_lea.vmem %s1339_s7, 32  ;;  %p1913_p11 = scmp.lt.s32.totalorder %s1339_s7, %s1339_s7 }
 0x26c   : > { %p1907_p4 = scmp.ne.s32.totalorder %s1339_s7, %s1906_s10  ;;  %p1914_p13 = scmp.lt.s32.totalorder %s1906_s10, %s1906_s10 }
 0x26e   : > { %p1908_p6 = pnand %p1907_p4, %p1744_p1  ;;  %p1915_p12 = por %p1914_p13, %p1913_p11 }
 0x270   : > { %p1909_p9 = pneg %p1908_p6 }
 0x272   : > { %p1916_p0 = pnand %p1915_p12, %p1909_p9 }
 0x274   : > { %1919 = shalt.err (!%p1916_p0)
}
 0x275   : > { %1733 = dma.vmem_to_hbm [thread:$0]  (%p1744_p1), %s1339_s7, 32, %s2441_s3, [#allocation4]  }
 0x276   : > { %1955 = dma.done.wait (%p1744_p1), [#allocation4], 32  }
 0x277   : > { %1957 = vsyncadd (%p1744_p1), [#allocation4], 4294967264 }
 0x278 PF: > { %p17_p2 = scmp.ge.s32.totalorder %s2024_s17, 4   ;;  %s2447_s12 = smov %s1964_s13 }
 0x279   : > { %s2448_s13 = smov %s1968_s14  ;;  %s2449_s14 = smov %s2034_s20 }
 0x27a   : > { %s2450_s15 = smov %s2024_s17  ;;  %19 = sbr.rel (!%p17_p2) target bundleno = 6 (0x6), region = 90 }
 0x27f   :  { %1351 = vsyncpa [#allocation3], 1 }
 0x280   :  { %1353 = vsyncpa [#allocation3 + $0x1], 1 }
 0x281   :  { %1354 = vsyncpa [#allocation6], 1 }
 0x282   :  { %1356 = vsyncpa [#allocation6 + $0x1], 1 }
 0x283   :  { %1357 = vsyncpa [#allocation4], 1 }
 0x284   :  { %1359 = vsyncpa [#allocation4 + $0x1], 1 }

</bundles_post_ra>
